<compile_context>
chip_gen: v6e
topology: v6e:2x2x1
jax: 0.10.0
libtpu: 0.0.40
codegen_flags: <defaults>
</compile_context>

<pallas_src>
import functools
import math

import jax
import jax.numpy as jnp
from jax import lax
from jax.experimental import pallas as pl
from jax.experimental.pallas import tpu as pltpu


def _pick_tile(dim, target, multiple):
    """Largest tile <= target that is a multiple of `multiple` and divides
    `dim`; falls back to the full dim (full-extent blocks are always legal)."""
    if dim <= target:
        return dim
    t = (target // multiple) * multiple
    while t >= multiple:
        if dim % t == 0:
            return t
        t -= multiple
    return dim


# ---------------------------------------------------------------------------
# Conv1D kernel:  out[M, N] = x[M, K] @ W[K, N] + b[1, N]   (tiled + pipelined)
# ---------------------------------------------------------------------------
def _conv1d_kernel(x_ref, w_ref, b_ref, o_ref, acc_ref):
    @pl.when(pl.program_id(2) == 0)
    def _init():
        acc_ref[...] = jnp.zeros_like(acc_ref)

    acc_ref[...] += jnp.dot(
        x_ref[...], w_ref[...], preferred_element_type=jnp.float32
    )

    @pl.when(pl.program_id(2) == pl.num_programs(2) - 1)
    def _finalize():
        o_ref[...] = (acc_ref[...] + b_ref[...]).astype(o_ref.dtype)


def conv1d(x, w, b, *, tm_target=512, tn_target=512, tk_target=512):
    """GPT-2 Conv1D: x [..., nx] @ w [nx, nf] + b [nf] -> [..., nf]."""
    *lead, nx = x.shape
    nf = w.shape[1]
    m = int(math.prod(lead)) if lead else 1
    x2 = x.reshape(m, nx)
    b2 = b.reshape(1, nf)

    tm = _pick_tile(m, tm_target, 8)
    tn = _pick_tile(nf, tn_target, 128)
    tk = _pick_tile(nx, tk_target, 128)
    grid = (m // tm, nf // tn, nx // tk)

    # TODO(synk): for v6e/v7x, casting x/w to bf16 (f32 accumulation) would
    # roughly double MXU throughput; kept in input dtype for exact parity.
    out = pl.pallas_call(
        _conv1d_kernel,
        out_shape=jax.ShapeDtypeStruct((m, nf), x.dtype),
        grid_spec=pltpu.PrefetchScalarGridSpec(
            num_scalar_prefetch=0,
            grid=grid,
            in_specs=[
                pl.BlockSpec((tm, tk), lambda i, j, k: (i, k)),
                pl.BlockSpec((tk, tn), lambda i, j, k: (k, j)),
                pl.BlockSpec((1, tn), lambda i, j, k: (0, j)),
            ],
            out_specs=pl.BlockSpec((tm, tn), lambda i, j, k: (i, j)),
            scratch_shapes=[pltpu.VMEM((tm, tn), jnp.float32)],
        ),
        compiler_params=pltpu.CompilerParams(
            dimension_semantics=("parallel", "parallel", "arbitrary")
        ),
    )(x2, w, b2)
    return out.reshape(*lead, nf)


# ---------------------------------------------------------------------------
# Flash-style causal attention kernel.
#   grid = (B, H, n_q_blocks, n_kv_blocks); kv axis is the "arbitrary"
#   reduction axis carrying online-softmax state in VMEM scratch.
# ---------------------------------------------------------------------------
def _flash_attn_kernel(q_ref, k_ref, v_ref, o_ref, m_sc, l_sc, acc_sc,
                       *, scale, mask_value, tq, tkv):
    qi = pl.program_id(2)
    kj = pl.program_id(3)

    @pl.when(kj == 0)
    def _init():
        m_sc[...] = jnp.full_like(m_sc, -1e30)
        l_sc[...] = jnp.zeros_like(l_sc)
        acc_sc[...] = jnp.zeros_like(acc_sc)

    # Skip kv blocks that lie entirely above the causal diagonal (~2x saving).
    @pl.when(kj * tkv < (qi + 1) * tq)
    def _compute():
        q = q_ref[0, 0]      # (tq, D)
        k = k_ref[0, 0]      # (tkv, D)
        v = v_ref[0, 0]      # (tkv, D)

        # Contract last dims directly: no explicit k.T (no XLU transpose).
        s = lax.dot_general(
            q, k, dimension_numbers=(((1,), (1,)), ((), ())),
            preferred_element_type=jnp.float32,
        ) * scale                                             # (tq, tkv)

        row = qi * tq + lax.broadcasted_iota(jnp.int32, (tq, tkv), 0)
        col = kj * tkv + lax.broadcasted_iota(jnp.int32, (tq, tkv), 1)
        s = jnp.where(col <= row, s, jnp.float32(mask_value))  # causal mask

        m_prev = m_sc[...]                                    # (tq, 1)
        m_new = jnp.maximum(m_prev, jnp.max(s, axis=-1, keepdims=True))
        alpha = jnp.exp(m_prev - m_new)
        p = jnp.exp(s - m_new)
        l_sc[...] = alpha * l_sc[...] + jnp.sum(p, axis=-1, keepdims=True)
        acc_sc[...] = alpha * acc_sc[...] + jnp.dot(
            p.astype(v.dtype), v, preferred_element_type=jnp.float32
        )
        m_sc[...] = m_new

    @pl.when(kj == pl.num_programs(3) - 1)
    def _finalize():
        # Deferred normalization: (tq, D) multiplies instead of (tq, S)
        # divides; reciprocal goes to the EUP slot.
        inv_l = pl.reciprocal(l_sc[...], approx=True)
        o_ref[0, 0] = (acc_sc[...] * inv_l).astype(o_ref.dtype)


def causal_attention(qkv_heads, num_heads, *, mask_value=-10000.0,
                     tq_target=256, tkv_target=512):
    """qkv_heads: [B, 3H, S, D] (q heads, then k heads, then v heads).

    Head split is fused into the BlockSpecs: the same array is passed three
    times, the index_maps pick head blocks h, H+h and 2H+h.
    Returns attention output [B, H, S, D].
    """
    B, three_h, S, D = qkv_heads.shape
    H = num_heads
    assert three_h == 3 * H

    tq = _pick_tile(S, tq_target, 8)
    tkv = _pick_tile(S, tkv_target, 8)
    grid = (B, H, S // tq, S // tkv)

    kernel = functools.partial(
        _flash_attn_kernel,
        scale=1.0 / math.sqrt(D),
        mask_value=mask_value,
        tq=tq,
        tkv=tkv,
    )

    q_spec = pl.BlockSpec((1, 1, tq, D), lambda b, h, qi, kj: (b, h, qi, 0))
    k_spec = pl.BlockSpec((1, 1, tkv, D), lambda b, h, qi, kj: (b, H + h, kj, 0))
    v_spec = pl.BlockSpec((1, 1, tkv, D),
                          lambda b, h, qi, kj: (b, 2 * H + h, kj, 0))
    o_spec = pl.BlockSpec((1, 1, tq, D), lambda b, h, qi, kj: (b, h, qi, 0))

    # Advisory cost hint (causal => ~half the S*S work for qk^T and p@v).
    flops = 2 * 2 * B * H * S * S * D // 2
    cost = pl.CostEstimate(
        flops=flops,
        transcendentals=B * H * S * S // 2,
        bytes_accessed=4 * (3 * B * H * S * D + B * H * S * D),
    )

    return pl.pallas_call(
        kernel,
        out_shape=jax.ShapeDtypeStruct((B, H, S, D), qkv_heads.dtype),
        grid_spec=pltpu.PrefetchScalarGridSpec(
            num_scalar_prefetch=0,
            grid=grid,
            in_specs=[q_spec, k_spec, v_spec],
            out_specs=o_spec,
            scratch_shapes=[
                pltpu.VMEM((tq, 1), jnp.float32),   # running max
                pltpu.VMEM((tq, 1), jnp.float32),   # running sum
                pltpu.VMEM((tq, D), jnp.float32),   # output accumulator
            ],
        ),
        compiler_params=pltpu.CompilerParams(
            dimension_semantics=("parallel", "parallel", "parallel",
                                 "arbitrary")
        ),
        cost_estimate=cost,
    )(qkv_heads, qkv_heads, qkv_heads)


# ---------------------------------------------------------------------------
# GPT2Attention forward (glue in plain JAX; hot paths in Pallas kernels)
# ---------------------------------------------------------------------------
def gpt2_attention_forward(hidden_states, params, num_heads):
    B, S, E = hidden_states.shape
    D = E // num_heads

    # c_attn: [B, S, E] -> [B, S, 3E]
    qkv = conv1d(hidden_states, params["c_attn_w"], params["c_attn_b"])

    # Single transpose to head-major layout [B, 3H, S, D]; the q/k/v head
    # split itself happens inside the attention BlockSpecs (no jnp.split,
    # no per-tensor transposes).
    qkv_heads = qkv.reshape(B, S, 3 * num_heads, D).transpose(0, 2, 1, 3)

    attn_out = causal_attention(qkv_heads, num_heads)          # [B, H, S, D]
    attn_out = attn_out.transpose(0, 2, 1, 3).reshape(B, S, E)  # merge heads

    # c_proj: [B, S, E] -> [B, S, E]
    out = conv1d(attn_out, params["c_proj_w"], params["c_proj_b"])
    # TODO(synk): attn_dropout / resid_dropout are eval-mode identities here.
    return out


# Pure-JAX reference for correctness checking.
def _reference_forward(hidden_states, params, num_heads):
    B, S, E = hidden_states.shape
    D = E // num_heads
    qkv = hidden_states @ params["c_attn_w"] + params["c_attn_b"]
    q, k, v = jnp.split(qkv, 3, axis=-1)

    def split_heads(t):
        return t.reshape(B, S, num_heads, D).transpose(0, 2, 1, 3)

    q, k, v = split_heads(q), split_heads(k), split_heads(v)
    w = jnp.einsum("bhqd,bhkd->bhqk", q, k) / math.sqrt(D)
    mask = jnp.tril(jnp.ones((S, S), dtype=bool))
    w = jnp.where(mask[None, None], w, jnp.float32(-10000.0))
    w = jax.nn.softmax(w, axis=-1)
    o = jnp.einsum("bhqk,bhkd->bhqd", w, v)
    o = o.transpose(0, 2, 1, 3).reshape(B, S, E)
    return o @ params["c_proj_w"] + params["c_proj_b"]


if __name__ == "__main__":
    # Small GPT-2-like config: batch=2, seq=8, hidden=32, heads=4 (head_dim=8)
    B, S, E, H = 2, 8, 32, 4

    key = jax.random.PRNGKey(0)
    k_x, k_attn_w, k_proj_w = jax.random.split(key, 3)

    hidden_states = jax.random.normal(k_x, (B, S, E), dtype=jnp.float32)

    params = {
        # Conv1D weights: normal(std=0.02), biases zero (as in module __init__)
        "c_attn_w": 0.02 * jax.random.normal(k_attn_w, (E, 3 * E), jnp.float32),
        "c_attn_b": jnp.zeros((3 * E,), jnp.float32),
        "c_proj_w": 0.02 * jax.random.normal(k_proj_w, (E, E), jnp.float32),
        "c_proj_b": jnp.zeros((E,), jnp.float32),
    }

    out = gpt2_attention_forward(hidden_states, params, num_heads=H)
    out = jax.block_until_ready(out)

    ref = _reference_forward(hidden_states, params, num_heads=H)
    assert out.shape == (B, S, E)
    # Tolerance loosened slightly vs f32-exact because of the approximate
    # (EUP) reciprocal in the softmax normalization.
    assert jnp.allclose(out, ref, atol=5e-4, rtol=5e-4), (
        "mismatch vs reference: max abs err = "
        f"{float(jnp.max(jnp.abs(out - ref)))}"
    )

    print("KERNEL_OK")
</pallas_src>

<mosaic_0001>
module attributes {stable_mosaic.version = 11 : i64} {
  func.func @_conv1d_kernel(%arg0: i32, %arg1: i32, %arg2: i32, %arg3: memref<16x32xf32, #tpu.memory_space<vmem>>, %arg4: memref<32x96xf32, #tpu.memory_space<vmem>>, %arg5: memref<1x96xf32, #tpu.memory_space<vmem>>, %arg6: memref<16x96xf32, #tpu.memory_space<vmem>>, %arg7: memref<16x96xf32, #tpu.memory_space<vmem>>) attributes {dimension_semantics = [#tpu.dimension_semantics<parallel>, #tpu.dimension_semantics<parallel>, #tpu.dimension_semantics<arbitrary>], iteration_bounds = array<i64: 1, 1, 1>, scalar_prefetch = 0 : i64, scratch_operands = 1 : i64, tpu.core_type = #tpu.core_type<tc>, window_params = [{transform_indices = @transform_0, window_bounds = array<i64: 16, 32>}, {transform_indices = @transform_1, window_bounds = array<i64: 32, 96>}, {transform_indices = @transform_2, window_bounds = array<i64: 1, 96>}, {transform_indices = @transform_3, window_bounds = array<i64: 16, 96>}]} {
    %c0_i32 = arith.constant 0 : i32
    %0 = arith.cmpi eq, %arg2, %c0_i32 : i32
    %1 = arith.extui %0 : i1 to i32
    %c0_i32_0 = arith.constant 0 : i32
    %2 = arith.cmpi ne, %1, %c0_i32_0 : i32
    scf.if %2 {
      %cst_10 = arith.constant 0.000000e+00 : f32
      %12 = vector.broadcast %cst_10 : f32 to vector<16x96xf32>
      %c0_11 = arith.constant 0 : index
      %c0_12 = arith.constant 0 : index
      %13 = vector.load %arg7[%c0_11, %c0_12] : memref<16x96xf32, #tpu.memory_space<vmem>>, vector<16x96xf32>
      tpu.vector_store %arg7[%c0_11, %c0_12], %12 {strides = array<i32>} : memref<16x96xf32, #tpu.memory_space<vmem>>, vector<16x96xf32>,
    } else {
    }
    %c0 = arith.constant 0 : index
    %c0_1 = arith.constant 0 : index
    %3 = vector.load %arg7[%c0, %c0_1] : memref<16x96xf32, #tpu.memory_space<vmem>>, vector<16x96xf32>
    %c0_2 = arith.constant 0 : index
    %c0_3 = arith.constant 0 : index
    %4 = vector.load %arg3[%c0_2, %c0_3] : memref<16x32xf32, #tpu.memory_space<vmem>>, vector<16x32xf32>
    %c0_4 = arith.constant 0 : index
    %c0_5 = arith.constant 0 : index
    %5 = vector.load %arg4[%c0_4, %c0_5] : memref<32x96xf32, #tpu.memory_space<vmem>>, vector<32x96xf32>
    %cst = arith.constant dense<0.000000e+00> : vector<16x96xf32>
    %6 = tpu.matmul %4, %5, %cst {dimension_numbers = #tpu.dot_dimension_numbers<[1], [0], [0], [1], [0, 0, 1, 1], [], []>} : vector<16x32xf32>, vector<32x96xf32>, vector<16x96xf32> -> vector<16x96xf32>
    %7 = arith.addf %3, %6 : vector<16x96xf32>
    %c0_6 = arith.constant 0 : index
    %c0_7 = arith.constant 0 : index
    %8 = vector.load %arg7[%c0_6, %c0_7] : memref<16x96xf32, #tpu.memory_space<vmem>>, vector<16x96xf32>
    tpu.vector_store %arg7[%c0_6, %c0_7], %7 {strides = array<i32>} : memref<16x96xf32, #tpu.memory_space<vmem>>, vector<16x96xf32>,
    %c0_i32_8 = arith.constant 0 : i32
    %9 = arith.cmpi eq, %arg2, %c0_i32_8 : i32
    %10 = arith.extui %9 : i1 to i32
    %c0_i32_9 = arith.constant 0 : i32
    %11 = arith.cmpi ne, %10, %c0_i32_9 : i32
    scf.if %11 {
      %c0_10 = arith.constant 0 : index
      %c0_11 = arith.constant 0 : index
      %12 = vector.load %arg7[%c0_10, %c0_11] : memref<16x96xf32, #tpu.memory_space<vmem>>, vector<16x96xf32>
      %c0_12 = arith.constant 0 : index
      %c0_13 = arith.constant 0 : index
      %13 = vector.load %arg5[%c0_12, %c0_13] : memref<1x96xf32, #tpu.memory_space<vmem>>, vector<1x96xf32>
      %14 = vector.broadcast %13 : vector<1x96xf32> to vector<16x96xf32>
      %15 = arith.addf %12, %14 : vector<16x96xf32>
      %c0_14 = arith.constant 0 : index
      %c0_15 = arith.constant 0 : index
      %16 = vector.load %arg6[%c0_14, %c0_15] : memref<16x96xf32, #tpu.memory_space<vmem>>, vector<16x96xf32>
      tpu.vector_store %arg6[%c0_14, %c0_15], %15 {strides = array<i32>} : memref<16x96xf32, #tpu.memory_space<vmem>>, vector<16x96xf32>,
    } else {
    }
    return
  }
  func.func @transform_0(%arg0: i32, %arg1: i32, %arg2: i32) -> (i32, i32) {
    %c0_i32 = arith.constant 0 : i32
    return %arg0, %arg2 : i32, i32
  }
  func.func @transform_1(%arg0: i32, %arg1: i32, %arg2: i32) -> (i32, i32) {
    %c0_i32 = arith.constant 0 : i32
    return %arg2, %arg1 : i32, i32
  }
  func.func @transform_2(%arg0: i32, %arg1: i32, %arg2: i32) -> (i32, i32) {
    %c0_i32 = arith.constant 0 : i32
    %c0_i32_0 = arith.constant 0 : i32
    return %c0_i32, %arg1 : i32, i32
  }
  func.func @transform_3(%arg0: i32, %arg1: i32, %arg2: i32) -> (i32, i32) {
    %c0_i32 = arith.constant 0 : i32
    return %arg0, %arg1 : i32, i32
  }
}

</mosaic_0001>

<bundles_post_ra>
// kernel: tpu_custom_call.1
= control target key start
LH: loop header
LB: loop body
LE: loop exit
PB: predicated region body
PF: predicated region fallthrough
CT: control target
= control target key end

     0   :  { %8 = vsyncpa [#allocation4], 0  ;;  %s326_s0 = inlined_call_operand.hbm [shape: f32[16,32], index: 0, kind: input, shape index: {}]   ;;  %s327_s1 = inlined_call_operand.hbm [shape: f32[32,96], index: 1, kind: input, shape index: {}]   ;;  %s328_s2 = inlined_call_operand.vmem [shape: f32[1,96], index: 2, kind: input, shape index: {}]   ;;  %s329_s3 = inlined_call_operand.hbm [shape: f32[16,96], index: 3, kind: output, shape index: {}]  }
   0x1   :  { %9 = vsyncpa [#allocation7], 0 }
   0x2   :  { %10 = vsyncpa [#allocation5], 0  ;;  %s271_s12 = smov [#allocation3]  }
   0x3   :  { %s16_s13 = sshll.u32 %s271_s12, 4  ;;  %s17_s13 = int_to_ptr.vmem [resolvable:$true] %s16_s13 }
   0x4   :  { %s213_s14 = scalar_lea.vmem %s17_s13, 256  ;;  %p218_p1 = scmp.lt.s32.totalorder %s17_s13, %s17_s13 }
   0x5   :  { %p214_p0 = scmp.ne.s32.totalorder %s17_s13, %s213_s14  ;;  %p219_p2 = scmp.lt.s32.totalorder %s213_s14, %s213_s14 }
   0x7   :  { %p220_p3 = por %p219_p2, %p218_p1 }
   0x9   :  { %p221_p4 = pnand %p220_p3, %p214_p0 }
   0xb   :  { %224 = shalt.err (!%p221_p4)
}
   0xc   :  { %s272_s15 = smov 128   ;;  %s273_s16 = smov 8  }
   0xd   :  { %22 = dma.hbm_to_vmem [thread:$0]  %s326_s0, 256, %s17_s13, [#allocation4], %s272_s15, %s272_s15, %s273_s16  }
   0xe   :  { %s274_s19 = smov [#allocation6]  }
   0xf   :  { %s28_s20 = sshll.u32 %s274_s19, 4  ;;  %s29_s20 = int_to_ptr.vmem [resolvable:$true] %s28_s20 }
  0x10   :  { %s233_s21 = scalar_lea.vmem %s29_s20, 512  ;;  %p238_p6 = scmp.lt.s32.totalorder %s29_s20, %s29_s20 }
  0x11   :  { %p234_p5 = scmp.ne.s32.totalorder %s29_s20, %s233_s21  ;;  %p239_p7 = scmp.lt.s32.totalorder %s233_s21, %s233_s21 }
  0x13   :  { %p240_p8 = por %p239_p7, %p238_p6 }
  0x15   :  { %p241_p9 = pnand %p240_p8, %p234_p5 }
  0x17   :  { %244 = shalt.err (!%p241_p9)
}
  0x18   :  { %34 = dma.hbm_to_vmem [thread:$0]  %s327_s1, 512, %s29_s20, [#allocation7], %s272_s15, %s272_s15, %s273_s16  }
  0x19   :  { %265 = dma.done.wait [#allocation4], 256  }
  0x1a   :  { %266 = vsyncadd [#allocation4], 4294967040 }
  0x1b   :  { %267 = dma.done.wait [#allocation7], 512  }
  0x1c   :  { %268 = vsyncadd [#allocation7], 4294966784  ;;  %vm47_vm0 = vcmask 785408   ;;  %v275_v0 = vmov 0.0   ;;  %vm58_vm1 = vcmask 261120   ;;  %v57_v1 = vld [vmem:[#allocation6 + $0x18] sm:$0xff] }
  0x1d   :  { %49 = vst.msk [vmem:[#allocation2 + $0x8] sm:$0xff] %vm47_vm0, %v275_v0  ;;  %48 = vst.msk [vmem:[#allocation2] sm:$0xff] %vm47_vm0, %v275_v0  ;;  %v56_v2 = vld [vmem:[#allocation6 + $0x10] sm:$0xff]  ;;  %188 = vmatprep.subr.mxu0 %v57_v1  ;;  %v55_v4 = vld [vmem:[#allocation6 + $0x8] sm:$0xff]  ;;  %s276_s24 = smov [#allocation8]  }
  0x1e   :  { %v52_v3 = vld [vmem:[#allocation3] sm:$0xff]  ;;  %189 = vmatpush3.msra.mxu0 %v57_v1  ;;  %v54_v5 = vld [vmem:[#allocation6] sm:$0xff]  ;;  %v53_v6 = vld [vmem:[#allocation3 + $0x8] sm:$0xff]  ;;  %s166_s25 = sshll.u32 %s276_s24, 4  ;;  %s167_s25 = int_to_ptr.vmem [resolvable:$true] %s166_s25 }
  0x1f   :  { %196 = vmatprep.mubr.msk.f32.mxu0 %vm58_vm1, %v52_v3  ;;  %190 = vmatprep.subr.mxu0 %v56_v2  ;;  %v181_v13 = vld [vmem:[%s328_s2] ss:$0 sm:$0xff]  ;;  %s245_s26 = scalar_lea.vmem %s167_s25, 256  ;;  %p250_p11 = scmp.lt.s32.totalorder %s167_s25, %s167_s25 }
  0x20   :  { %191 = vmatpush3.msra.mxu0 %v56_v2  ;;  %p246_p10 = scmp.ne.s32.totalorder %s167_s25, %s245_s26  ;;  %p251_p12 = scmp.lt.s32.totalorder %s245_s26, %s245_s26 }
  0x21   :  { %192 = vmatprep.subr.mxu0 %v55_v4 }
  0x22   :  { %193 = vmatpush3.msra.mxu0 %v55_v4  ;;  %p252_p13 = por %p251_p12, %p250_p11 }
  0x23   :  { %194 = vmatprep.subr.mxu0 %v54_v5 }
  0x24   :  { %195 = vmatpush3.msra.mxu0 %v54_v5  ;;  %v51_v7 = vld [vmem:[#allocation2 + $0x8] sm:$0xff]  ;;  %v50_v9 = vld [vmem:[#allocation2] sm:$0xff]  ;;  %p253_p0 = pnand %p252_p13, %p246_p10 }
  0x25   :  { %197 = vmatmul.mubr.msk.f32.vlgmr.msra.gmra.mxu0 %vm58_vm1, %v53_v6 }
  0xe5   :  { %v198_v8 = vpop.f32.mrf.mxu0 }
  0xe6   :  { %v141_v10 = vadd.f32 %v198_v8, %v51_v7 }
  0xe7   :  { %v131_v11 = vpop.f32.mrf.mxu0 }
  0xe8   :  { %144 = vst.msk [vmem:[#allocation2 + $0x8] sm:$0xff] %vm47_vm0, %v141_v10  ;;  %v140_v12 = vadd.f32 %v131_v11, %v50_v9 }
  0xea   :  { %143 = vst.msk [vmem:[#allocation2] sm:$0xff] %vm47_vm0, %v140_v12 }
  0xef   :  { %v149_v14 = vld [vmem:[#allocation2 + $0x8] sm:$0xff] }
  0xf0   :  { %v158_v15 = vadd.f32 %v181_v13, %v149_v14 }
  0xf1   :  { %v148_v16 = vld [vmem:[#allocation2] sm:$0xff] }
  0xf2   :  { %v157_v17 = vadd.f32 %v181_v13, %v148_v16  ;;  %160 = vst.msk [vmem:[#allocation8 + $0x8] sm:$0xff] %vm47_vm0, %v158_v15 }
  0xf4   :  { %159 = vst.msk [vmem:[#allocation8] sm:$0xff] %vm47_vm0, %v157_v17 }
  0xf5   :  { %256 = shalt.err (!%p253_p0)
}
  0xf6   :  { %172 = dma.vmem_to_hbm [thread:$0]  %s167_s25, 256, %s329_s3, [#allocation5], %s272_s15, %s272_s15, %s273_s16  }
  0xf7   :  { %269 = dma.done.wait [#allocation5], 256  }
  0xf8   :  { %270 = vsyncadd [#allocation5], 4294967040 }
  0xf9   :  { %176 = vsyncpa [#allocation4], 1 }
  0xfa   :  { %177 = vsyncpa [#allocation7], 1 }
  0xfb   :  { %178 = vsyncpa [#allocation5], 1 }

</bundles_post_ra>
